<compile_context>
chip_gen: v5e
topology: v5e:2x2
jax: 0.10.0
libtpu: 0.0.40
codegen_flags: <defaults>
</compile_context>

<pallas_src>
import functools

import numpy as np
import jax
import jax.numpy as jnp
from jax.experimental import pallas as pl
from jax.experimental.pallas import tpu as pltpu

KSIZE = 13
RADIUS = KSIZE // 2


# ---------------------------------------------------------------------------
# Hardware introspection (trace time).
# ---------------------------------------------------------------------------
@functools.lru_cache(maxsize=None)
def _chip_info():
    """Returns (generation, physical VMEM bytes, multi_tensorcore)."""
    gen = 6
    try:
        kind = jax.devices()[0].device_kind
        digits = [ch for ch in kind if ch.isdigit()]
        if digits:
            gen = int(digits[0])
    except Exception:
        pass
    vmem_cap = (64 << 20) if gen >= 7 else (128 << 20)
    try:
        vmem_cap = int(pltpu.get_tpu_info().vmem_capacity_bytes)
    except Exception:
        pass
    vmem_cap = max(vmem_cap, 48 << 20)   # safety floor
    multi_tc = gen >= 7                  # v7x: 2 TCs/chip; v5e/v6e: 1.
    return gen, vmem_cap, multi_tc


def _kron_max_elems(gen):
    # Fused (HW, HW) matmul does ~2*HW flops/output element; keep it below the
    # bandwidth/compute ridge of each generation (v5e ridge is much lower).
    return 768 if gen <= 5 else 2048


# ---------------------------------------------------------------------------
# Host-side (numpy, trace-time) construction of the blur matrices.
# ---------------------------------------------------------------------------
def _gaussian_kernel_1d(ksize, sigma):
    # Matches cv2.getGaussianKernel(ksize, sigma).
    if sigma <= 0:
        sigma = 0.3 * ((ksize - 1) * 0.5 - 1) + 0.8
    half = (ksize - 1) * 0.5
    x = np.arange(ksize, dtype=np.float64) - half
    k = np.exp(-(x * x) / (2.0 * sigma * sigma))
    return k / k.sum()


def _reflect101(idx, n):
    # cv2 BORDER_REFLECT_101 with repeated reflection (matches cv2's
    # borderInterpolate loop, including tiny n <= RADIUS).  n == 1 clamps to 0.
    if n == 1:
        return 0
    period = 2 * (n - 1)
    idx = idx % period
    return idx if idx < n else period - idx


@functools.lru_cache(maxsize=None)
def _banded_matrix(n, weights):
    # M[src, dst]: contribution of x[src] to out[dst] for the 1-D 13-tap blur
    # with the reflect-101 border folded in  (out = x @ M along that axis).
    m = np.zeros((n, n), dtype=np.float64)
    for dst in range(n):
        for k, w in enumerate(weights):
            m[_reflect101(dst + k - RADIUS, n), dst] += w
    return m


@functools.lru_cache(maxsize=None)
def _kron_matrix(h, w, weights):
    # Whole-plane blur on flattened planes: out_flat = x_flat @ kron(M_h, M_w).
    return np.kron(_banded_matrix(h, weights), _banded_matrix(w, weights))


@functools.lru_cache(maxsize=None)
def _separable_matrices(h, w, weights):
    bv = np.ascontiguousarray(_banded_matrix(h, weights).T)   # out = Bv @ t
    bh = _banded_matrix(w, weights)                           # t   = x  @ Bh
    return bv, bh


# ---------------------------------------------------------------------------
# Pallas kernels.
# ---------------------------------------------------------------------------
def _kron_blur_kernel(k_ref, x_ref, o_ref):
    # x_ref: (P, H*W) lane-dense flattened planes; k_ref: (H*W, H*W).
    # Whole blur (both 13-tap passes + reflect-101 border) = one MXU matmul.
    o_ref[...] = jnp.dot(
        x_ref[...], k_ref[...], preferred_element_type=jnp.float32
    ).astype(o_ref.dtype)


def _separable_blur_kernel(bv_ref, bh_ref, x_ref, o_ref):
    # x_ref: (P, H, W).  out[p] = Bv @ (x[p] @ Bh), borders folded into Bv/Bh.
    p, h, w = x_ref.shape
    bv = bv_ref[...]
    bh = bh_ref[...]
    if h % 8 == 0:
        # Horizontal pass batched across planes: ONE matmul with M = P*H.
        t = jnp.dot(x_ref[...].reshape(p * h, w), bh,
                    preferred_element_type=jnp.float32)
        if bh.dtype != jnp.float32:
            t = t.astype(bh.dtype)
        for q in range(p):
            o_ref[q] = jnp.dot(
                bv, t[q * h:(q + 1) * h], preferred_element_type=jnp.float32
            ).astype(o_ref.dtype)
    else:
        # Fallback (H not sublane-aligned): per-plane matmuls, stored immediately.
        for q in range(p):
            tq = jnp.dot(x_ref[q], bh, preferred_element_type=jnp.float32)
            if bh.dtype != jnp.float32:
                tq = tq.astype(bh.dtype)
            o_ref[q] = jnp.dot(
                bv, tq, preferred_element_type=jnp.float32
            ).astype(o_ref.dtype)


# ---------------------------------------------------------------------------
# Block planning / pallas_call wrappers.
# ---------------------------------------------------------------------------
def _planes_per_block(nc, per_plane_bytes, budget_bytes, require_two_steps,
                      max_planes=None):
    best = 1
    for p in range(1, nc + 1):
        if max_planes is not None and p > max_planes:
            break
        if p > 1 and p * per_plane_bytes > budget_bytes:
            break
        if nc % p:
            continue
        if require_two_steps and nc > 1 and nc // p < 2:
            continue
        best = p
    return best


def _const_spec(shape, single_buffer):
    ndim = len(shape)
    index_map = lambda i: (0,) * ndim
    if single_buffer:
        # Grid-invariant matrix: one resident copy, no double-buffer VMEM.
        return pl.BlockSpec(shape, index_map, pipeline_mode=pl.Buffered(1))
    return pl.BlockSpec(shape, index_map)


def _run_kron(x3, kmat, p, hw, vmem_limit, single_buffer):
    g = x3.shape[0]
    return pl.pallas_call(
        _kron_blur_kernel,
        out_shape=jax.ShapeDtypeStruct(x3.shape, x3.dtype),
        grid=(g,),
        in_specs=[
            _const_spec((hw, hw), single_buffer),
            pl.BlockSpec((None, p, hw), lambda i: (i, 0, 0)),
        ],
        out_specs=pl.BlockSpec((None, p, hw), lambda i: (i, 0, 0)),
        compiler_params=pltpu.CompilerParams(
            dimension_semantics=("parallel",),
            vmem_limit_bytes=int(vmem_limit),
        ),
    )(kmat, x3)


def _run_separable(x4, bv, bh, p, h, w, vmem_limit, single_buffer):
    g = x4.shape[0]
    return pl.pallas_call(
        _separable_blur_kernel,
        out_shape=jax.ShapeDtypeStruct(x4.shape, x4.dtype),
        grid=(g,),
        in_specs=[
            _const_spec((h, h), single_buffer),
            _const_spec((w, w), single_buffer),
            pl.BlockSpec((None, p, h, w), lambda i: (i, 0, 0, 0)),
        ],
        out_specs=pl.BlockSpec((None, p, h, w), lambda i: (i, 0, 0, 0)),
        compiler_params=pltpu.CompilerParams(
            dimension_semantics=("parallel",),
            vmem_limit_bytes=int(vmem_limit),
        ),
    )(bv, bh, x4)


def _call_with_fallback(run, *args):
    # pl.Buffered(1) on the constant matrices is purely a VMEM optimization;
    # fall back to default double-buffering if the installed jax rejects it.
    try:
        return run(*args, True)
    except Exception:
        return run(*args, False)


def _blur_one(img, weights):
    gen, vmem_cap, multi_tc = _chip_info()
    orig_dtype = img.dtype
    is_int = jnp.issubdtype(orig_dtype, jnp.integer)
    x = img.astype(jnp.float32) if is_int else img
    mat_dtype = jnp.bfloat16 if x.dtype == jnp.bfloat16 else jnp.float32
    mat_isz = np.dtype(mat_dtype).itemsize
    isz = np.dtype(x.dtype).itemsize

    n, c, h, w = x.shape
    nc, hw = n * c, h * w
    plane_bytes = hw * isz
    headroom = 16 << 20
    slack = 4 << 20

    if hw <= _kron_max_elems(gen):
        # Small planes: lane-dense flattened rows, whole blur = one matmul.
        kmat = jnp.asarray(_kron_matrix(h, w, weights), dtype=mat_dtype)
        kron_bytes = hw * hw * mat_isz
        vmem_limit_cap = min((40 << 20) if multi_tc else (48 << 20),
                             vmem_cap - headroom)
        # per plane: in + out blocks (double-buffered) + f32 matmul result.
        per_plane = 4 * hw * isz + 4 * hw
        budget = vmem_limit_cap - 2 * kron_bytes - slack
        p = _planes_per_block(nc, per_plane, max(budget, per_plane), multi_tc)
        g = nc // p
        need = 2 * kron_bytes + p * per_plane + slack
        vmem_limit = min(max(need, 32 << 20), vmem_limit_cap)
        x3 = x.reshape(g, p, hw)
        out = _call_with_fallback(_run_kron, x3, kmat, p, hw, vmem_limit)
        out = out.reshape(n, c, h, w)
    else:
        # Larger planes: separable banded matmuls on whole-plane blocks.
        # TODO(synk): halo-tiled H/W blocks + banded K-tiling for very large
        # planes (1080p/4K) — needed on v7x (64 MiB VMEM) and compute-bound v5e.
        bv_np, bh_np = _separable_matrices(h, w, weights)
        bv = jnp.asarray(bv_np, dtype=mat_dtype)
        bh = jnp.asarray(bh_np, dtype=mat_dtype)
        mat_bytes = (h * h + w * w) * mat_isz
        sep_cap = vmem_cap - headroom
        if not multi_tc:
            sep_cap = min(sep_cap, 100 << 20)
        # per plane: in + out (double-buffered) + f32 intermediate t + result.
        per_plane = 4 * plane_bytes + 8 * hw
        budget = sep_cap - 2 * mat_bytes - slack
        p = _planes_per_block(nc, per_plane, max(budget, per_plane), multi_tc,
                              max_planes=8)
        g = nc // p
        need = 2 * mat_bytes + p * per_plane + slack
        vmem_limit = min(max(need, 32 << 20), sep_cap)
        x4 = x.reshape(g, p, h, w)
        out = _call_with_fallback(_run_separable, x4, bv, bh, p, h, w, vmem_limit)
        out = out.reshape(n, c, h, w)

    if is_int:
        info = jnp.iinfo(orig_dtype)
        out = jnp.clip(jnp.round(out), info.min, info.max).astype(orig_dtype)
    return out


# ---------------------------------------------------------------------------
# Module-equivalent wrapper.
# ---------------------------------------------------------------------------
def make_gaussian_blur(sigma_range, p, *, seed=0):
    """Deterministic stand-in for GaussianBlur.__init__ (np.random draws)."""
    rng = np.random.RandomState(seed)
    sigma = int(rng.randint(sigma_range[0], sigma_range[1]))
    should_apply = bool(rng.random_sample() < p)
    weights = tuple(float(v) for v in _gaussian_kernel_1d(KSIZE, float(sigma)))

    def forward(img):
        # Mirrors GaussianBlur.forward: probabilistic no-op + list handling.
        if not should_apply:
            return img
        imgs_in = img if isinstance(img, list) else [img]
        imgs_out = [_blur_one(im, weights) for im in imgs_in]
        return imgs_out if isinstance(img, list) else imgs_out[0]

    return forward, sigma, should_apply


# ---------------------------------------------------------------------------
# Pure-JAX reference (pad + 13-tap separable) for validation.
# ---------------------------------------------------------------------------
def _reference_blur(img, weights):
    w = [float(v) for v in weights]
    x = jnp.pad(img.astype(jnp.float32),
                ((0, 0), (0, 0), (RADIUS, RADIUS), (RADIUS, RADIUS)),
                mode="reflect")
    hh, ww = img.shape[-2], img.shape[-1]
    tmp = sum(w[k] * x[..., :, k:k + ww] for k in range(KSIZE))
    out = sum(w[k] * tmp[..., k:k + hh, :] for k in range(KSIZE))
    return out


if __name__ == "__main__":
    # p=1.0 so the blur path is guaranteed to execute the Pallas kernels.
    blur, sigma, applied = make_gaussian_blur(sigma_range=[1, 5], p=1.0, seed=0)
    wts = _gaussian_kernel_1d(KSIZE, float(sigma))

    # 1) Small planes -> fused Kronecker path (lane-dense H*W rows).
    x = jax.random.normal(jax.random.PRNGKey(0), (2, 4, 16, 16), dtype=jnp.float32)
    y = jax.block_until_ready(blur(x))
    assert y.shape == x.shape and y.dtype == x.dtype
    err = float(jnp.max(jnp.abs(y - _reference_blur(x, wts))))
    assert err < 5e-3, f"kron path max abs err {err}"

    # 2) Mid-size planes + list handling (Kron on v6e/v7x, separable on v5e).
    x2 = jax.random.normal(jax.random.PRNGKey(1), (1, 2, 40, 48), dtype=jnp.float32)
    y2 = jax.block_until_ready(blur([x2])[0])
    assert y2.shape == x2.shape and y2.dtype == x2.dtype
    err2 = float(jnp.max(jnp.abs(y2 - _reference_blur(x2, wts))))
    assert err2 < 5e-3, f"mid path max abs err {err2}"

    # 3) Larger planes -> separable path (batched horizontal matmul, W=128 lanes).
    x3 = jax.random.normal(jax.random.PRNGKey(2), (1, 2, 64, 128), dtype=jnp.float32)
    y3 = jax.block_until_ready(blur(x3))
    assert y3.shape == x3.shape and y3.dtype == x3.dtype
    err3 = float(jnp.max(jnp.abs(y3 - _reference_blur(x3, wts))))
    assert err3 < 5e-3, f"separable path max abs err {err3}"

    print("KERNEL_OK")
</pallas_src>

<mosaic_0001>
module attributes {stable_mosaic.version = 11 : i64} {
  func.func @_kron_blur_kernel(%arg0: i32, %arg1: memref<256x256xf32, #tpu.memory_space<vmem>>, %arg2: memref<1x8x256xf32, #tpu.memory_space<vmem>>, %arg3: memref<1x8x256xf32, #tpu.memory_space<vmem>>) attributes {dimension_semantics = [#tpu.dimension_semantics<parallel>], iteration_bounds = array<i64: 1>, scalar_prefetch = 0 : i64, scratch_operands = 0 : i64, tpu.core_type = #tpu.core_type<tc>, window_params = [{pipeline_mode = #tpu.pipeline_mode<synchronous>, transform_indices = @transform_0, window_bounds = array<i64: 256, 256>}, {transform_indices = @transform_1, window_bounds = array<i64: 1, 8, 256>}, {transform_indices = @transform_2, window_bounds = array<i64: 1, 8, 256>}]} {
    %c0 = arith.constant 0 : index
    %c0_0 = arith.constant 0 : index
    %c0_1 = arith.constant 0 : index
    %0 = vector.load %arg2[%c0, %c0_0, %c0_1] : memref<1x8x256xf32, #tpu.memory_space<vmem>>, vector<1x8x256xf32>
    %1 = vector.shape_cast %0 : vector<1x8x256xf32> to vector<8x256xf32>
    %c0_2 = arith.constant 0 : index
    %c0_3 = arith.constant 0 : index
    %2 = vector.load %arg1[%c0_2, %c0_3] : memref<256x256xf32, #tpu.memory_space<vmem>>, vector<256x256xf32>
    %cst = arith.constant dense<0.000000e+00> : vector<8x256xf32>
    %3 = tpu.matmul %1, %2, %cst {dimension_numbers = #tpu.dot_dimension_numbers<[1], [0], [0], [1], [0, 0, 1, 1], [], []>} : vector<8x256xf32>, vector<256x256xf32>, vector<8x256xf32> -> vector<8x256xf32>
    %c0_4 = arith.constant 0 : index
    %c0_5 = arith.constant 0 : index
    %c0_6 = arith.constant 0 : index
    %4 = vector.load %arg3[%c0_4, %c0_5, %c0_6] : memref<1x8x256xf32, #tpu.memory_space<vmem>>, vector<1x8x256xf32>
    %5 = vector.shape_cast %4 : vector<1x8x256xf32> to vector<8x256xf32>
    %6 = vector.shape_cast %3 : vector<8x256xf32> to vector<1x8x256xf32>
    tpu.vector_store %arg3[%c0_4, %c0_5, %c0_6], %6 {strides = array<i32>} : memref<1x8x256xf32, #tpu.memory_space<vmem>>, vector<1x8x256xf32>,
    return
  }
  func.func @transform_0(%arg0: i32) -> (i32, i32) {
    %c0_i32 = arith.constant 0 : i32
    %c0_i32_0 = arith.constant 0 : i32
    %c0_i32_1 = arith.constant 0 : i32
    return %c0_i32, %c0_i32_0 : i32, i32
  }
  func.func @transform_1(%arg0: i32) -> (i32, i32, i32) {
    %c0_i32 = arith.constant 0 : i32
    %c0_i32_0 = arith.constant 0 : i32
    %c0_i32_1 = arith.constant 0 : i32
    return %arg0, %c0_i32, %c0_i32_0 : i32, i32, i32
  }
  func.func @transform_2(%arg0: i32) -> (i32, i32, i32) {
    %c0_i32 = arith.constant 0 : i32
    %c0_i32_0 = arith.constant 0 : i32
    %c0_i32_1 = arith.constant 0 : i32
    return %arg0, %c0_i32, %c0_i32_0 : i32, i32, i32
  }
}

module attributes {stable_mosaic.version = 11 : i64} {
  func.func @_kron_blur_kernel(%arg0: i32, %arg1: memref<256x256xf32, #tpu.memory_space<vmem>>, %arg2: memref<1x8x256xf32, #tpu.memory_space<vmem>>, %arg3: memref<1x8x256xf32, #tpu.memory_space<vmem>>) attributes {dimension_semantics = [#tpu.dimension_semantics<parallel>], iteration_bounds = array<i64: 1>, scalar_prefetch = 0 : i64, scratch_operands = 0 : i64, tpu.core_type = #tpu.core_type<tc>, window_params = [{pipeline_mode = #tpu.pipeline_mode<synchronous>, transform_indices = @transform_0, window_bounds = array<i64: 256, 256>}, {transform_indices = @transform_1, window_bounds = array<i64: 1, 8, 256>}, {transform_indices = @transform_2, window_bounds = array<i64: 1, 8, 256>}]} {
    %c0 = arith.constant 0 : index
    %c0_0 = arith.constant 0 : index
    %c0_1 = arith.constant 0 : index
    %0 = vector.load %arg2[%c0, %c0_0, %c0_1] : memref<1x8x256xf32, #tpu.memory_space<vmem>>, vector<1x8x256xf32>
    %1 = vector.shape_cast %0 : vector<1x8x256xf32> to vector<8x256xf32>
    %c0_2 = arith.constant 0 : index
    %c0_3 = arith.constant 0 : index
    %2 = vector.load %arg1[%c0_2, %c0_3] : memref<256x256xf32, #tpu.memory_space<vmem>>, vector<256x256xf32>
    %cst = arith.constant dense<0.000000e+00> : vector<8x256xf32>
    %3 = tpu.matmul %1, %2, %cst {dimension_numbers = #tpu.dot_dimension_numbers<[1], [0], [0], [1], [0, 0, 1, 1], [], []>} : vector<8x256xf32>, vector<256x256xf32>, vector<8x256xf32> -> vector<8x256xf32>
    %c0_4 = arith.constant 0 : index
    %c0_5 = arith.constant 0 : index
    %c0_6 = arith.constant 0 : index
    %4 = vector.load %arg3[%c0_4, %c0_5, %c0_6] : memref<1x8x256xf32, #tpu.memory_space<vmem>>, vector<1x8x256xf32>
    %5 = vector.shape_cast %4 : vector<1x8x256xf32> to vector<8x256xf32>
    %6 = vector.shape_cast %3 : vector<8x256xf32> to vector<1x8x256xf32>
    tpu.vector_store %arg3[%c0_4, %c0_5, %c0_6], %6 {strides = array<i32>} : memref<1x8x256xf32, #tpu.memory_space<vmem>>, vector<1x8x256xf32>,
    return
  }
  func.func @transform_0(%arg0: i32) -> (i32, i32) {
    %c0_i32 = arith.constant 0 : i32
    %c0_i32_0 = arith.constant 0 : i32
    %c0_i32_1 = arith.constant 0 : i32
    return %c0_i32, %c0_i32_0 : i32, i32
  }
  func.func @transform_1(%arg0: i32) -> (i32, i32, i32) {
    %c0_i32 = arith.constant 0 : i32
    %c0_i32_0 = arith.constant 0 : i32
    %c0_i32_1 = arith.constant 0 : i32
    return %arg0, %c0_i32, %c0_i32_0 : i32, i32, i32
  }
  func.func @transform_2(%arg0: i32) -> (i32, i32, i32) {
    %c0_i32 = arith.constant 0 : i32
    %c0_i32_0 = arith.constant 0 : i32
    %c0_i32_1 = arith.constant 0 : i32
    return %arg0, %c0_i32, %c0_i32_0 : i32, i32, i32
  }
}

</mosaic_0001>

<bundles_post_ra>
// kernel: tpu_custom_call.1
= control target key start
LH: loop header
LB: loop body
LE: loop exit
PB: predicated region body
PF: predicated region fallthrough
CT: control target
= control target key end

     0   :  { %7 = vsyncpa [#allocation3], 0  ;;  %s320_s0 = inlined_call_operand.hbm [shape: f32[256,256], index: 0, kind: input, shape index: {}]   ;;  %s321_s1 = inlined_call_operand.hbm [shape: f32[1,8,256], index: 1, kind: input, shape index: {}]   ;;  %s322_s2 = inlined_call_operand.hbm [shape: f32[1,8,256], index: 2, kind: output, shape index: {}]  }
   0x1   :  { %8 = vsyncpa [#allocation6], 0 }
   0x2   :  { %9 = vsyncpa [#allocation4], 0  ;;  %s14_s11 = sshll.u32 %s320_s0, 4  ;;  %s291_s12 = smov [#allocation2]   ;;  %s15_s11 = int_to_ptr.hbm [resolvable:$true] %s14_s11 }
   0x3   :  { %s16_s13 = sshll.u32 %s291_s12, 4  ;;  %s28_s16 = sshll.u32 %s321_s1, 4  ;;  %s17_s13 = int_to_ptr.vmem [resolvable:$true] %s16_s13  ;;  %s29_s16 = int_to_ptr.hbm [resolvable:$true] %s28_s16 }
   0x4   :  { %s292_s17 = smov 256   ;;  %s293_s18 = smov 16  }
   0x5   :  { %22 = dma.hbm_to_vmem [thread:$0]  %s15_s11, 8192, %s17_s13, [#allocation3], %s292_s17, %s292_s17, %s293_s18  }
   0x6   :  { %s294_s19 = smov [#allocation5]  }
   0x7   :  { %s30_s20 = sshll.u32 %s294_s19, 4  ;;  %s31_s20 = int_to_ptr.vmem [resolvable:$true] %s30_s20 }
   0x8   :  { %33 = dma.hbm_to_vmem [thread:$0]  %s29_s16, 256, %s31_s20, [#allocation6]  }
   0x9   :  { %285 = dma.done.wait [#allocation3], 8192  }
   0xa   :  { %286 = vsyncadd [#allocation3], 4294959104 }
   0xb   :  { %287 = dma.done.wait [#allocation6], 256  }
   0xc   :  { %288 = vsyncadd [#allocation6], 4294967040  ;;  %v75_v0 = vld [vmem:[#allocation2 + $0xf8] sm:$0xff]  ;;  %v73_v2 = vld [vmem:[#allocation2 + $0xe8] sm:$0xff]  ;;  %s295_s0 = smov [#allocation7]   ;;  %s197_s23 = sshll.u32 %s322_s2, 4  ;;  %s198_s23 = int_to_ptr.hbm [resolvable:$true] %s197_s23 }
   0xd   :  { %v107_v1 = vld [vmem:[#allocation2 + $0x1f8] sm:$0xff]  ;;  %148 = vmatpush.msra.mxu2 %v75_v0  ;;  %v105_v3 = vld [vmem:[#allocation2 + $0x1e8] sm:$0xff]  ;;  %v74_v6 = vld [vmem:[#allocation2 + $0xf0] sm:$0xff]  ;;  %s195_s1 = sshll.u32 %s295_s0, 4  ;;  %s196_s1 = int_to_ptr.vmem [resolvable:$true] %s195_s1 }
   0xe   :  { %168 = vmatpush.msra.mxu3 %v107_v1  ;;  %v71_v4 = vld [vmem:[#allocation2 + $0xd8] sm:$0xff]  ;;  %v106_v7 = vld [vmem:[#allocation2 + $0x1f0] sm:$0xff]  ;;  %v72_v8 = vld [vmem:[#allocation2 + $0xe0] sm:$0xff]  ;;  %108 = vmatpush.msra.mxu0 %v74_v6 }
   0xf   :  { %v103_v5 = vld [vmem:[#allocation2 + $0x1d8] sm:$0xff]  ;;  %149 = vmatpush.msra.mxu2 %v73_v2  ;;  %v104_v9 = vld [vmem:[#allocation2 + $0x1e0] sm:$0xff]  ;;  %128 = vmatpush.msra.mxu1 %v106_v7  ;;  %v69_v10 = vld [vmem:[#allocation2 + $0xc8] sm:$0xff] }
  0x10   :  { %169 = vmatpush.msra.mxu3 %v105_v3  ;;  %v101_v11 = vld [vmem:[#allocation2 + $0x1c8] sm:$0xff]  ;;  %v70_v12 = vld [vmem:[#allocation2 + $0xd0] sm:$0xff]  ;;  %109 = vmatpush.msra.mxu0 %v72_v8  ;;  %v67_v14 = vld [vmem:[#allocation2 + $0xb8] sm:$0xff] }
  0x11   :  { %150 = vmatpush.msra.mxu2 %v71_v4  ;;  %v102_v13 = vld [vmem:[#allocation2 + $0x1d0] sm:$0xff]  ;;  %129 = vmatpush.msra.mxu1 %v104_v9  ;;  %v99_v15 = vld [vmem:[#allocation2 + $0x1b8] sm:$0xff]  ;;  %v68_v16 = vld [vmem:[#allocation2 + $0xc0] sm:$0xff] }
  0x12   :  { %170 = vmatpush.msra.mxu3 %v103_v5  ;;  %v100_v17 = vld [vmem:[#allocation2 + $0x1c0] sm:$0xff]  ;;  %110 = vmatpush.msra.mxu0 %v70_v12  ;;  %v65_v18 = vld [vmem:[#allocation2 + $0xa8] sm:$0xff]  ;;  %v66_v20 = vld [vmem:[#allocation2 + $0xb0] sm:$0xff] }
  0x13   :  { %151 = vmatpush.msra.mxu2 %v69_v10  ;;  %130 = vmatpush.msra.mxu1 %v102_v13  ;;  %v97_v19 = vld [vmem:[#allocation2 + $0x1a8] sm:$0xff]  ;;  %v98_v21 = vld [vmem:[#allocation2 + $0x1b0] sm:$0xff]  ;;  %v63_v22 = vld [vmem:[#allocation2 + $0x98] sm:$0xff] }
  0x14   :  { %171 = vmatpush.msra.mxu3 %v101_v11  ;;  %111 = vmatpush.msra.mxu0 %v68_v16  ;;  %v95_v23 = vld [vmem:[#allocation2 + $0x198] sm:$0xff]  ;;  %v64_v24 = vld [vmem:[#allocation2 + $0xa0] sm:$0xff]  ;;  %v61_v26 = vld [vmem:[#allocation2 + $0x88] sm:$0xff] }
  0x15   :  { %152 = vmatpush.msra.mxu2 %v67_v14  ;;  %131 = vmatpush.msra.mxu1 %v100_v17  ;;  %v96_v25 = vld [vmem:[#allocation2 + $0x1a0] sm:$0xff]  ;;  %v93_v27 = vld [vmem:[#allocation2 + $0x188] sm:$0xff]  ;;  %v62_v28 = vld [vmem:[#allocation2 + $0x90] sm:$0xff] }
  0x16   :  { %172 = vmatpush.msra.mxu3 %v99_v15  ;;  %112 = vmatpush.msra.mxu0 %v66_v20  ;;  %v94_v29 = vld [vmem:[#allocation2 + $0x190] sm:$0xff]  ;;  %v59_v30 = vld [vmem:[#allocation2 + $0x78] sm:$0xff]  ;;  %v60_v32 = vld [vmem:[#allocation2 + $0x80] sm:$0xff] }
  0x17   :  { %153 = vmatpush.msra.mxu2 %v65_v18  ;;  %132 = vmatpush.msra.mxu1 %v98_v21  ;;  %v91_v31 = vld [vmem:[#allocation2 + $0x178] sm:$0xff]  ;;  %v92_v33 = vld [vmem:[#allocation2 + $0x180] sm:$0xff]  ;;  %v57_v34 = vld [vmem:[#allocation2 + $0x68] sm:$0xff] }
  0x18   :  { %173 = vmatpush.msra.mxu3 %v97_v19  ;;  %113 = vmatpush.msra.mxu0 %v64_v24  ;;  %v89_v35 = vld [vmem:[#allocation2 + $0x168] sm:$0xff]  ;;  %v58_v36 = vld [vmem:[#allocation2 + $0x70] sm:$0xff]  ;;  %v55_v38 = vld [vmem:[#allocation2 + $0x58] sm:$0xff] }
  0x19   :  { %154 = vmatpush.msra.mxu2 %v63_v22  ;;  %133 = vmatpush.msra.mxu1 %v96_v25  ;;  %v90_v37 = vld [vmem:[#allocation2 + $0x170] sm:$0xff]  ;;  %v87_v39 = vld [vmem:[#allocation2 + $0x158] sm:$0xff]  ;;  %v56_v40 = vld [vmem:[#allocation2 + $0x60] sm:$0xff] }
  0x1a   :  { %174 = vmatpush.msra.mxu3 %v95_v23  ;;  %114 = vmatpush.msra.mxu0 %v62_v28  ;;  %v88_v41 = vld [vmem:[#allocation2 + $0x160] sm:$0xff]  ;;  %v53_v42 = vld [vmem:[#allocation2 + $0x48] sm:$0xff]  ;;  %v54_v44 = vld [vmem:[#allocation2 + $0x50] sm:$0xff] }
  0x1b   :  { %155 = vmatpush.msra.mxu2 %v61_v26  ;;  %134 = vmatpush.msra.mxu1 %v94_v29  ;;  %v85_v43 = vld [vmem:[#allocation2 + $0x148] sm:$0xff]  ;;  %v86_v45 = vld [vmem:[#allocation2 + $0x150] sm:$0xff]  ;;  %v51_v46 = vld [vmem:[#allocation2 + $0x38] sm:$0xff] }
  0x1c   :  { %175 = vmatpush.msra.mxu3 %v93_v27  ;;  %115 = vmatpush.msra.mxu0 %v60_v32  ;;  %v83_v47 = vld [vmem:[#allocation2 + $0x138] sm:$0xff]  ;;  %v52_v48 = vld [vmem:[#allocation2 + $0x40] sm:$0xff]  ;;  %v49_v50 = vld [vmem:[#allocation2 + $0x28] sm:$0xff] }
  0x1d   :  { %156 = vmatpush.msra.mxu2 %v59_v30  ;;  %135 = vmatpush.msra.mxu1 %v92_v33  ;;  %v84_v49 = vld [vmem:[#allocation2 + $0x140] sm:$0xff]  ;;  %v81_v51 = vld [vmem:[#allocation2 + $0x128] sm:$0xff]  ;;  %v50_v52 = vld [vmem:[#allocation2 + $0x30] sm:$0xff] }
  0x1e   :  { %176 = vmatpush.msra.mxu3 %v91_v31  ;;  %116 = vmatpush.msra.mxu0 %v58_v36  ;;  %v82_v53 = vld [vmem:[#allocation2 + $0x130] sm:$0xff]  ;;  %v47_v54 = vld [vmem:[#allocation2 + $0x18] sm:$0xff]  ;;  %v48_v56 = vld [vmem:[#allocation2 + $0x20] sm:$0xff] }
  0x1f   :  { %157 = vmatpush.msra.mxu2 %v57_v34  ;;  %136 = vmatpush.msra.mxu1 %v90_v37  ;;  %v79_v55 = vld [vmem:[#allocation2 + $0x118] sm:$0xff]  ;;  %v80_v57 = vld [vmem:[#allocation2 + $0x120] sm:$0xff]  ;;  %v45_v58 = vld [vmem:[#allocation2 + $0x8] sm:$0xff] }
  0x20   :  { %177 = vmatpush.msra.mxu3 %v89_v35  ;;  %117 = vmatpush.msra.mxu0 %v56_v40  ;;  %v77_v59 = vld [vmem:[#allocation2 + $0x108] sm:$0xff]  ;;  %v42_v60 = vld [vmem:[#allocation5] sm:$0xff]  ;;  %v46_v62 = vld [vmem:[#allocation2 + $0x10] sm:$0xff] }
  0x21   :  { %158 = vmatpush.msra.mxu2 %v55_v38  ;;  %137 = vmatpush.msra.mxu1 %v88_v41  ;;  %v43_v61 = vld [vmem:[#allocation5 + $0x8] sm:$0xff]  ;;  %v78_v63 = vld [vmem:[#allocation2 + $0x110] sm:$0xff]  ;;  %v44_v0 = vld [vmem:[#allocation2] sm:$0xff] }
  0x22   :  { %178 = vmatpush.msra.mxu3 %v87_v39  ;;  %118 = vmatpush.msra.mxu0 %v54_v44  ;;  %v76_v1 = vld [vmem:[#allocation2 + $0x100] sm:$0xff] }
  0x23   :  { %159 = vmatpush.msra.mxu2 %v53_v42  ;;  %138 = vmatpush.msra.mxu1 %v86_v45 }
  0x24   :  { %179 = vmatpush.msra.mxu3 %v85_v43  ;;  %119 = vmatpush.msra.mxu0 %v52_v48 }
  0x25   :  { %160 = vmatpush.msra.mxu2 %v51_v46  ;;  %139 = vmatpush.msra.mxu1 %v84_v49 }
  0x26   :  { %180 = vmatpush.msra.mxu3 %v83_v47  ;;  %120 = vmatpush.msra.mxu0 %v50_v52 }
  0x27   :  { %161 = vmatpush.msra.mxu2 %v49_v50  ;;  %140 = vmatpush.msra.mxu1 %v82_v53 }
  0x28   :  { %181 = vmatpush.msra.mxu3 %v81_v51  ;;  %121 = vmatpush.msra.mxu0 %v48_v56 }
  0x29   :  { %162 = vmatpush.msra.mxu2 %v47_v54  ;;  %141 = vmatpush.msra.mxu1 %v80_v57 }
  0x2a   :  { %182 = vmatpush.msra.mxu3 %v79_v55  ;;  %122 = vmatpush.msra.mxu0 %v46_v62 }
  0x2b   :  { %163 = vmatpush.msra.mxu2 %v45_v58  ;;  %142 = vmatpush.msra.mxu1 %v78_v63 }
  0x2c   :  { %183 = vmatpush.msra.mxu3 %v77_v59  ;;  %164 = vmatmul.f32.vlgmr.msra.gmra.mxu2 %v42_v60 }
  0x2d   :  { %184 = vmatmul.f32.vlgmr.msra.gmra.mxu3 %v43_v61  ;;  %123 = vmatpush.msra.mxu0 %v44_v0 }
  0x2e   :  { %143 = vmatpush.msra.mxu1 %v76_v1  ;;  %124 = vmatmul.f32.vlgmr.msra.gmra.mxu0 %v42_v60 }
  0x2f   :  { %144 = vmatmul.f32.vlgmr.msra.gmra.mxu1 %v43_v61 }
  0xab   :  { %v125_v2 = vpop.f32.mrf.mxu0 }
  0xac   :  { %v145_v3 = vpop.f32.mrf.mxu1 }
  0xad   :  { %v146_v4 = vadd.f32 %v145_v3, %v125_v2 }
  0xaf   :  { %v165_v5 = vpop.f32.mrf.mxu2  ;;  %188 = vst [vmem:[#allocation7] sm:$0xff] %v146_v4 }
  0xb0   :  { %v185_v6 = vpop.f32.mrf.mxu3 }
  0xb1   :  { %v186_v7 = vadd.f32 %v185_v6, %v165_v5 }
  0xb3   :  { %189 = vst [vmem:[#allocation7 + $0x8] sm:$0xff] %v186_v7 }
  0xb4   :  { %200 = dma.vmem_to_hbm [thread:$0]  %s196_s1, 256, %s198_s23, [#allocation4]  }
  0xb5   :  { %289 = dma.done.wait [#allocation4], 256  }
  0xb6   :  { %290 = vsyncadd [#allocation4], 4294967040 }
  0xb7   :  { %205 = vsyncpa [#allocation3], 1 }
  0xb8   :  { %206 = vsyncpa [#allocation6], 1 }
  0xb9   :  { %207 = vsyncpa [#allocation4], 1 }

// kernel: tpu_custom_call.1
= control target key start
LH: loop header
LB: loop body
LE: loop exit
PB: predicated region body
PF: predicated region fallthrough
CT: control target
= control target key end

     0   :  { %7 = vsyncpa [#allocation3], 0  ;;  %s320_s0 = inlined_call_operand.hbm [shape: f32[256,256], index: 0, kind: input, shape index: {}]   ;;  %s321_s1 = inlined_call_operand.hbm [shape: f32[1,8,256], index: 1, kind: input, shape index: {}]   ;;  %s322_s2 = inlined_call_operand.hbm [shape: f32[1,8,256], index: 2, kind: output, shape index: {}]  }
   0x1   :  { %8 = vsyncpa [#allocation6], 0 }
   0x2   :  { %9 = vsyncpa [#allocation4], 0  ;;  %s14_s11 = sshll.u32 %s320_s0, 4  ;;  %s291_s12 = smov [#allocation2]   ;;  %s15_s11 = int_to_ptr.hbm [resolvable:$true] %s14_s11 }
   0x3   :  { %s16_s13 = sshll.u32 %s291_s12, 4  ;;  %s28_s16 = sshll.u32 %s321_s1, 4  ;;  %s17_s13 = int_to_ptr.vmem [resolvable:$true] %s16_s13  ;;  %s29_s16 = int_to_ptr.hbm [resolvable:$true] %s28_s16 }
   0x4   :  { %s292_s17 = smov 256   ;;  %s293_s18 = smov 16  }
   0x5   :  { %22 = dma.hbm_to_vmem [thread:$0]  %s15_s11, 8192, %s17_s13, [#allocation3], %s292_s17, %s292_s17, %s293_s18  }
   0x6   :  { %s294_s19 = smov [#allocation5]  }
   0x7   :  { %s30_s20 = sshll.u32 %s294_s19, 4  ;;  %s31_s20 = int_to_ptr.vmem [resolvable:$true] %s30_s20 }
   0x8   :  { %33 = dma.hbm_to_vmem [thread:$0]  %s29_s16, 256, %s31_s20, [#allocation6]  }
   0x9   :  { %285 = dma.done.wait [#allocation3], 8192  }
   0xa   :  { %286 = vsyncadd [#allocation3], 4294959104 }
   0xb   :  { %287 = dma.done.wait [#allocation6], 256  }
   0xc   :  { %288 = vsyncadd [#allocation6], 4294967040  ;;  %v75_v0 = vld [vmem:[#allocation2 + $0xf8] sm:$0xff]  ;;  %v73_v2 = vld [vmem:[#allocation2 + $0xe8] sm:$0xff]  ;;  %s295_s0 = smov [#allocation7]   ;;  %s197_s23 = sshll.u32 %s322_s2, 4  ;;  %s198_s23 = int_to_ptr.hbm [resolvable:$true] %s197_s23 }
   0xd   :  { %v107_v1 = vld [vmem:[#allocation2 + $0x1f8] sm:$0xff]  ;;  %148 = vmatpush.msra.mxu2 %v75_v0  ;;  %v105_v3 = vld [vmem:[#allocation2 + $0x1e8] sm:$0xff]  ;;  %v74_v6 = vld [vmem:[#allocation2 + $0xf0] sm:$0xff]  ;;  %s195_s1 = sshll.u32 %s295_s0, 4  ;;  %s196_s1 = int_to_ptr.vmem [resolvable:$true] %s195_s1 }
   0xe   :  { %168 = vmatpush.msra.mxu3 %v107_v1  ;;  %v71_v4 = vld [vmem:[#allocation2 + $0xd8] sm:$0xff]  ;;  %v106_v7 = vld [vmem:[#allocation2 + $0x1f0] sm:$0xff]  ;;  %v72_v8 = vld [vmem:[#allocation2 + $0xe0] sm:$0xff]  ;;  %108 = vmatpush.msra.mxu0 %v74_v6 }
   0xf   :  { %v103_v5 = vld [vmem:[#allocation2 + $0x1d8] sm:$0xff]  ;;  %149 = vmatpush.msra.mxu2 %v73_v2  ;;  %v104_v9 = vld [vmem:[#allocation2 + $0x1e0] sm:$0xff]  ;;  %128 = vmatpush.msra.mxu1 %v106_v7  ;;  %v69_v10 = vld [vmem:[#allocation2 + $0xc8] sm:$0xff] }
  0x10   :  { %169 = vmatpush.msra.mxu3 %v105_v3  ;;  %v101_v11 = vld [vmem:[#allocation2 + $0x1c8] sm:$0xff]  ;;  %v70_v12 = vld [vmem:[#allocation2 + $0xd0] sm:$0xff]  ;;  %109 = vmatpush.msra.mxu0 %v72_v8  ;;  %v67_v14 = vld [vmem:[#allocation2 + $0xb8] sm:$0xff] }
  0x11   :  { %150 = vmatpush.msra.mxu2 %v71_v4  ;;  %v102_v13 = vld [vmem:[#allocation2 + $0x1d0] sm:$0xff]  ;;  %129 = vmatpush.msra.mxu1 %v104_v9  ;;  %v99_v15 = vld [vmem:[#allocation2 + $0x1b8] sm:$0xff]  ;;  %v68_v16 = vld [vmem:[#allocation2 + $0xc0] sm:$0xff] }
  0x12   :  { %170 = vmatpush.msra.mxu3 %v103_v5  ;;  %v100_v17 = vld [vmem:[#allocation2 + $0x1c0] sm:$0xff]  ;;  %110 = vmatpush.msra.mxu0 %v70_v12  ;;  %v65_v18 = vld [vmem:[#allocation2 + $0xa8] sm:$0xff]  ;;  %v66_v20 = vld [vmem:[#allocation2 + $0xb0] sm:$0xff] }
  0x13   :  { %151 = vmatpush.msra.mxu2 %v69_v10  ;;  %130 = vmatpush.msra.mxu1 %v102_v13  ;;  %v97_v19 = vld [vmem:[#allocation2 + $0x1a8] sm:$0xff]  ;;  %v98_v21 = vld [vmem:[#allocation2 + $0x1b0] sm:$0xff]  ;;  %v63_v22 = vld [vmem:[#allocation2 + $0x98] sm:$0xff] }
  0x14   :  { %171 = vmatpush.msra.mxu3 %v101_v11  ;;  %111 = vmatpush.msra.mxu0 %v68_v16  ;;  %v95_v23 = vld [vmem:[#allocation2 + $0x198] sm:$0xff]  ;;  %v64_v24 = vld [vmem:[#allocation2 + $0xa0] sm:$0xff]  ;;  %v61_v26 = vld [vmem:[#allocation2 + $0x88] sm:$0xff] }
  0x15   :  { %152 = vmatpush.msra.mxu2 %v67_v14  ;;  %131 = vmatpush.msra.mxu1 %v100_v17  ;;  %v96_v25 = vld [vmem:[#allocation2 + $0x1a0] sm:$0xff]  ;;  %v93_v27 = vld [vmem:[#allocation2 + $0x188] sm:$0xff]  ;;  %v62_v28 = vld [vmem:[#allocation2 + $0x90] sm:$0xff] }
  0x16   :  { %172 = vmatpush.msra.mxu3 %v99_v15  ;;  %112 = vmatpush.msra.mxu0 %v66_v20  ;;  %v94_v29 = vld [vmem:[#allocation2 + $0x190] sm:$0xff]  ;;  %v59_v30 = vld [vmem:[#allocation2 + $0x78] sm:$0xff]  ;;  %v60_v32 = vld [vmem:[#allocation2 + $0x80] sm:$0xff] }
  0x17   :  { %153 = vmatpush.msra.mxu2 %v65_v18  ;;  %132 = vmatpush.msra.mxu1 %v98_v21  ;;  %v91_v31 = vld [vmem:[#allocation2 + $0x178] sm:$0xff]  ;;  %v92_v33 = vld [vmem:[#allocation2 + $0x180] sm:$0xff]  ;;  %v57_v34 = vld [vmem:[#allocation2 + $0x68] sm:$0xff] }
  0x18   :  { %173 = vmatpush.msra.mxu3 %v97_v19  ;;  %113 = vmatpush.msra.mxu0 %v64_v24  ;;  %v89_v35 = vld [vmem:[#allocation2 + $0x168] sm:$0xff]  ;;  %v58_v36 = vld [vmem:[#allocation2 + $0x70] sm:$0xff]  ;;  %v55_v38 = vld [vmem:[#allocation2 + $0x58] sm:$0xff] }
  0x19   :  { %154 = vmatpush.msra.mxu2 %v63_v22  ;;  %133 = vmatpush.msra.mxu1 %v96_v25  ;;  %v90_v37 = vld [vmem:[#allocation2 + $0x170] sm:$0xff]  ;;  %v87_v39 = vld [vmem:[#allocation2 + $0x158] sm:$0xff]  ;;  %v56_v40 = vld [vmem:[#allocation2 + $0x60] sm:$0xff] }
  0x1a   :  { %174 = vmatpush.msra.mxu3 %v95_v23  ;;  %114 = vmatpush.msra.mxu0 %v62_v28  ;;  %v88_v41 = vld [vmem:[#allocation2 + $0x160] sm:$0xff]  ;;  %v53_v42 = vld [vmem:[#allocation2 + $0x48] sm:$0xff]  ;;  %v54_v44 = vld [vmem:[#allocation2 + $0x50] sm:$0xff] }
  0x1b   :  { %155 = vmatpush.msra.mxu2 %v61_v26  ;;  %134 = vmatpush.msra.mxu1 %v94_v29  ;;  %v85_v43 = vld [vmem:[#allocation2 + $0x148] sm:$0xff]  ;;  %v86_v45 = vld [vmem:[#allocation2 + $0x150] sm:$0xff]  ;;  %v51_v46 = vld [vmem:[#allocation2 + $0x38] sm:$0xff] }
  0x1c   :  { %175 = vmatpush.msra.mxu3 %v93_v27  ;;  %115 = vmatpush.msra.mxu0 %v60_v32  ;;  %v83_v47 = vld [vmem:[#allocation2 + $0x138] sm:$0xff]  ;;  %v52_v48 = vld [vmem:[#allocation2 + $0x40] sm:$0xff]  ;;  %v49_v50 = vld [vmem:[#allocation2 + $0x28] sm:$0xff] }
  0x1d   :  { %156 = vmatpush.msra.mxu2 %v59_v30  ;;  %135 = vmatpush.msra.mxu1 %v92_v33  ;;  %v84_v49 = vld [vmem:[#allocation2 + $0x140] sm:$0xff]  ;;  %v81_v51 = vld [vmem:[#allocation2 + $0x128] sm:$0xff]  ;;  %v50_v52 = vld [vmem:[#allocation2 + $0x30] sm:$0xff] }
  0x1e   :  { %176 = vmatpush.msra.mxu3 %v91_v31  ;;  %116 = vmatpush.msra.mxu0 %v58_v36  ;;  %v82_v53 = vld [vmem:[#allocation2 + $0x130] sm:$0xff]  ;;  %v47_v54 = vld [vmem:[#allocation2 + $0x18] sm:$0xff]  ;;  %v48_v56 = vld [vmem:[#allocation2 + $0x20] sm:$0xff] }
  0x1f   :  { %157 = vmatpush.msra.mxu2 %v57_v34  ;;  %136 = vmatpush.msra.mxu1 %v90_v37  ;;  %v79_v55 = vld [vmem:[#allocation2 + $0x118] sm:$0xff]  ;;  %v80_v57 = vld [vmem:[#allocation2 + $0x120] sm:$0xff]  ;;  %v45_v58 = vld [vmem:[#allocation2 + $0x8] sm:$0xff] }
  0x20   :  { %177 = vmatpush.msra.mxu3 %v89_v35  ;;  %117 = vmatpush.msra.mxu0 %v56_v40  ;;  %v77_v59 = vld [vmem:[#allocation2 + $0x108] sm:$0xff]  ;;  %v42_v60 = vld [vmem:[#allocation5] sm:$0xff]  ;;  %v46_v62 = vld [vmem:[#allocation2 + $0x10] sm:$0xff] }
  0x21   :  { %158 = vmatpush.msra.mxu2 %v55_v38  ;;  %137 = vmatpush.msra.mxu1 %v88_v41  ;;  %v43_v61 = vld [vmem:[#allocation5 + $0x8] sm:$0xff]  ;;  %v78_v63 = vld [vmem:[#allocation2 + $0x110] sm:$0xff]  ;;  %v44_v0 = vld [vmem:[#allocation2] sm:$0xff] }
  0x22   :  { %178 = vmatpush.msra.mxu3 %v87_v39  ;;  %118 = vmatpush.msra.mxu0 %v54_v44  ;;  %v76_v1 = vld [vmem:[#allocation2 + $0x100] sm:$0xff] }
  0x23   :  { %159 = vmatpush.msra.mxu2 %v53_v42  ;;  %138 = vmatpush.msra.mxu1 %v86_v45 }
  0x24   :  { %179 = vmatpush.msra.mxu3 %v85_v43  ;;  %119 = vmatpush.msra.mxu0 %v52_v48 }
  0x25   :  { %160 = vmatpush.msra.mxu2 %v51_v46  ;;  %139 = vmatpush.msra.mxu1 %v84_v49 }
  0x26   :  { %180 = vmatpush.msra.mxu3 %v83_v47  ;;  %120 = vmatpush.msra.mxu0 %v50_v52 }
  0x27   :  { %161 = vmatpush.msra.mxu2 %v49_v50  ;;  %140 = vmatpush.msra.mxu1 %v82_v53 }
  0x28   :  { %181 = vmatpush.msra.mxu3 %v81_v51  ;;  %121 = vmatpush.msra.mxu0 %v48_v56 }
  0x29   :  { %162 = vmatpush.msra.mxu2 %v47_v54  ;;  %141 = vmatpush.msra.mxu1 %v80_v57 }
  0x2a   :  { %182 = vmatpush.msra.mxu3 %v79_v55  ;;  %122 = vmatpush.msra.mxu0 %v46_v62 }
  0x2b   :  { %163 = vmatpush.msra.mxu2 %v45_v58  ;;  %142 = vmatpush.msra.mxu1 %v78_v63 }
  0x2c   :  { %183 = vmatpush.msra.mxu3 %v77_v59  ;;  %164 = vmatmul.f32.vlgmr.msra.gmra.mxu2 %v42_v60 }
  0x2d   :  { %184 = vmatmul.f32.vlgmr.msra.gmra.mxu3 %v43_v61  ;;  %123 = vmatpush.msra.mxu0 %v44_v0 }
  0x2e   :  { %143 = vmatpush.msra.mxu1 %v76_v1  ;;  %124 = vmatmul.f32.vlgmr.msra.gmra.mxu0 %v42_v60 }
  0x2f   :  { %144 = vmatmul.f32.vlgmr.msra.gmra.mxu1 %v43_v61 }
  0xab   :  { %v125_v2 = vpop.f32.mrf.mxu0 }
  0xac   :  { %v145_v3 = vpop.f32.mrf.mxu1 }
  0xad   :  { %v146_v4 = vadd.f32 %v145_v3, %v125_v2 }
  0xaf   :  { %v165_v5 = vpop.f32.mrf.mxu2  ;;  %188 = vst [vmem:[#allocation7] sm:$0xff] %v146_v4 }
  0xb0   :  { %v185_v6 = vpop.f32.mrf.mxu3 }
  0xb1   :  { %v186_v7 = vadd.f32 %v185_v6, %v165_v5 }
  0xb3   :  { %189 = vst [vmem:[#allocation7 + $0x8] sm:$0xff] %v186_v7 }
  0xb4   :  { %200 = dma.vmem_to_hbm [thread:$0]  %s196_s1, 256, %s198_s23, [#allocation4]  }
  0xb5   :  { %289 = dma.done.wait [#allocation4], 256  }
  0xb6   :  { %290 = vsyncadd [#allocation4], 4294967040 }
  0xb7   :  { %205 = vsyncpa [#allocation3], 1 }
  0xb8   :  { %206 = vsyncpa [#allocation6], 1 }
  0xb9   :  { %207 = vsyncpa [#allocation4], 1 }

</bundles_post_ra>
